<compile_context>
chip_gen: v6e
topology: v6e:2x2x1
jax: 0.10.0
libtpu: 0.0.40
codegen_flags: <defaults>
</compile_context>

<pallas_src>
import jax
import jax.numpy as jnp
from jax.experimental import pallas as pl
from jax.experimental.pallas import tpu as pltpu


def _round_up(x, m):
    return (x + m - 1) // m * m


def _pick_row_tile(n, h, min_steps=8):
    """Largest divisor of h such that the grid has >= min_steps steps."""
    for th in range(h, 0, -1):
        if h % th == 0 and n * (h // th) >= min_steps:
            return th
    return 1


def convblock_kernel(x_ref, w_ref, scale_ref, bias_ref, o_ref):
    # x_ref:     (1, P, K)          bf16  patch rows (P = th*W pixels, K = KH*KW*C_in)
    # w_ref:     (K, C_out_pad)     bf16  folded conv weights
    # scale_ref: (1, C_out_pad)     f32   folded BN scale
    # bias_ref:  (1, C_out_pad)     f32   folded BN bias (incl. conv bias, run_mean)
    # o_ref:     (1, P, C_out_pad)  bf16  output tile
    acc = jnp.dot(x_ref[0], w_ref[...], preferred_element_type=jnp.float32)
    y = acc * scale_ref[...] + bias_ref[...]              # eval-mode BN, f32 math
    o_ref[0] = jnp.maximum(y, 0.0).astype(o_ref.dtype)    # ReLU, cast to bf16 on store


def conv_block_forward(x, conv_w, conv_b, gamma, beta, run_mean, run_var,
                       eps=1e-5, th=None):
    """x: NCHW float32. conv_w: (C_out, C_in, KH, KW). Returns NCHW float32."""
    N, C_in, H, W = x.shape
    C_out, _, KH, KW = conv_w.shape
    PH, PW = KH // 2, KW // 2                 # "same" padding for stride 1

    if th is None:
        th = _pick_row_tile(N, H)             # deep enough grid for pipelining / 2 TCs
    assert H % th == 0, "choose a row-tile th dividing H"
    num_t = H // th
    NT = N * num_t
    P = th * W                                # output pixels per grid step
    K = KH * KW * C_in                        # folded contraction depth (36 here)

    # ---- activations: NCHW -> NHWC bf16, zero-pad, fold 3x3 taps into channels ----
    xt = jnp.transpose(x, (0, 2, 3, 1)).astype(jnp.bfloat16)          # (N,H,W,C)
    xp = jnp.pad(xt, ((0, 0), (PH, PH), (PW, PW), (0, 0)))            # (N,H+2,W+2,C)
    patches = jnp.concatenate(
        [xp[:, i:i + H, j:j + W, :] for i in range(KH) for j in range(KW)],
        axis=-1)                                                      # (N,H,W,K)
    patches = patches.reshape(N, num_t, th, W, K).reshape(NT, P, K)

    # ---- weights: (C_out,C_in,KH,KW) -> (K, C_out_pad) bf16, lane-dense output ----
    C_out_pad = _round_up(C_out, 128)
    # index layout matches patches: k = (i*KW + j)*C_in + c
    w_r = jnp.transpose(conv_w, (2, 3, 1, 0)).reshape(K, C_out)
    w_pad = jnp.pad(w_r, ((0, 0), (0, C_out_pad - C_out))).astype(jnp.bfloat16)

    # ---- fold eval-mode BN + conv bias into per-channel scale/bias (f32) ----
    scale = gamma / jnp.sqrt(run_var + eps)                           # (C_out,)
    bias = scale * (conv_b - run_mean) + beta                         # (C_out,)
    scale_p = jnp.pad(scale, (0, C_out_pad - C_out)).reshape(1, C_out_pad)
    bias_p = jnp.pad(bias, (0, C_out_pad - C_out)).reshape(1, C_out_pad)
    scale_p = scale_p.astype(jnp.float32)
    bias_p = bias_p.astype(jnp.float32)
    # padded channels have scale=bias=0 -> ReLU -> 0, sliced off below

    out_flat = pl.pallas_call(
        convblock_kernel,
        out_shape=jax.ShapeDtypeStruct((NT, P, C_out_pad), jnp.bfloat16),
        grid_spec=pltpu.PrefetchScalarGridSpec(
            num_scalar_prefetch=0,
            grid=(NT,),
            in_specs=[
                pl.BlockSpec((1, P, K), lambda i: (i, 0, 0)),
                pl.BlockSpec((K, C_out_pad), lambda i: (0, 0)),       # grid-invariant
                pl.BlockSpec((1, C_out_pad), lambda i: (0, 0)),       # grid-invariant
                pl.BlockSpec((1, C_out_pad), lambda i: (0, 0)),       # grid-invariant
            ],
            out_specs=pl.BlockSpec((1, P, C_out_pad), lambda i: (i, 0, 0)),
        ),
        compiler_params=pltpu.CompilerParams(
            dimension_semantics=("parallel",),
            # v7x-safe budget (64 MiB physical); blocks here are tiny anyway.
            vmem_limit_bytes=48 * 1024 * 1024),
    )(patches, w_pad, scale_p, bias_p)

    # ---- back to NCHW: drop channel padding, merge row tiles ----
    out = out_flat.reshape(N, num_t, th, W, C_out_pad)[..., :C_out]
    out = out.reshape(N, H, W, C_out)
    return jnp.transpose(out, (0, 3, 1, 2)).astype(jnp.float32)


def reference_forward(x, conv_w, conv_b, gamma, beta, run_mean, run_var,
                      eps=1e-5):
    y = jax.lax.conv_general_dilated(
        x, conv_w, window_strides=(1, 1), padding=((1, 1), (1, 1)),
        dimension_numbers=("NCHW", "OIHW", "NCHW"))
    y = y + conv_b.reshape(1, -1, 1, 1)
    y = (y - run_mean.reshape(1, -1, 1, 1)) / jnp.sqrt(
        run_var.reshape(1, -1, 1, 1) + eps)
    y = y * gamma.reshape(1, -1, 1, 1) + beta.reshape(1, -1, 1, 1)
    return jnp.maximum(y, 0.0)


if __name__ == "__main__":
    key = jax.random.PRNGKey(0)
    k1, k2, k3, k4, k5, k6, k7 = jax.random.split(key, 7)

    N, C_in, H, W = 2, 4, 16, 16
    C_out, KH, KW = 8, 3, 3

    x = jax.random.normal(k1, (N, C_in, H, W), dtype=jnp.float32)
    conv_w = jax.random.normal(k2, (C_out, C_in, KH, KW), jnp.float32) * 0.1
    conv_b = jax.random.normal(k3, (C_out,), jnp.float32) * 0.1
    gamma = 1.0 + 0.1 * jax.random.normal(k4, (C_out,), jnp.float32)
    beta = 0.1 * jax.random.normal(k5, (C_out,), jnp.float32)
    run_mean = 0.05 * jax.random.normal(k6, (C_out,), jnp.float32)
    run_var = 1.0 + 0.1 * jax.random.uniform(k7, (C_out,), jnp.float32)

    out = conv_block_forward(x, conv_w, conv_b, gamma, beta, run_mean, run_var)
    out = jax.block_until_ready(out)

    ref = reference_forward(x, conv_w, conv_b, gamma, beta, run_mean, run_var)
    assert out.shape == (N, C_out, H, W)
    # bf16 MXU operands with f32 accumulation -> tolerance loosened vs pure f32
    assert jnp.allclose(out, ref, atol=3e-2, rtol=3e-2), "mismatch vs reference"

    print("KERNEL_OK")
</pallas_src>

<mosaic_0001>
module attributes {stable_mosaic.version = 11 : i64} {
  func.func @convblock_kernel(%arg0: i32, %arg1: memref<1x64x36xbf16, #tpu.memory_space<vmem>>, %arg2: memref<36x128xbf16, #tpu.memory_space<vmem>>, %arg3: memref<1x128xf32, #tpu.memory_space<vmem>>, %arg4: memref<1x128xf32, #tpu.memory_space<vmem>>, %arg5: memref<1x64x128xbf16, #tpu.memory_space<vmem>>) attributes {dimension_semantics = [#tpu.dimension_semantics<parallel>], iteration_bounds = array<i64: 8>, scalar_prefetch = 0 : i64, scratch_operands = 0 : i64, tpu.core_type = #tpu.core_type<tc>, window_params = [{transform_indices = @transform_0, window_bounds = array<i64: 1, 64, 36>}, {pipeline_mode = #tpu.pipeline_mode<synchronous>, transform_indices = @transform_1, window_bounds = array<i64: 36, 128>}, {pipeline_mode = #tpu.pipeline_mode<synchronous>, transform_indices = @transform_2, window_bounds = array<i64: 1, 128>}, {pipeline_mode = #tpu.pipeline_mode<synchronous>, transform_indices = @transform_3, window_bounds = array<i64: 1, 128>}, {transform_indices = @transform_4, window_bounds = array<i64: 1, 64, 128>}]} {
    %c0 = arith.constant 0 : index
    %c0_0 = arith.constant 0 : index
    %c0_1 = arith.constant 0 : index
    %0 = vector.load %arg1[%c0, %c0_0, %c0_1] : memref<1x64x36xbf16, #tpu.memory_space<vmem>>, vector<1x64x36xbf16>
    %1 = vector.shape_cast %0 : vector<1x64x36xbf16> to vector<64x36xbf16>
    %c0_2 = arith.constant 0 : index
    %c0_3 = arith.constant 0 : index
    %2 = vector.load %arg2[%c0_2, %c0_3] : memref<36x128xbf16, #tpu.memory_space<vmem>>, vector<36x128xbf16>
    %cst = arith.constant dense<0.000000e+00> : vector<64x128xf32>
    %3 = tpu.matmul %1, %2, %cst {dimension_numbers = #tpu.dot_dimension_numbers<[1], [0], [0], [1], [0, 0, 1, 1], [], []>} : vector<64x36xbf16>, vector<36x128xbf16>, vector<64x128xf32> -> vector<64x128xf32>
    %c0_4 = arith.constant 0 : index
    %c0_5 = arith.constant 0 : index
    %4 = vector.load %arg3[%c0_4, %c0_5] : memref<1x128xf32, #tpu.memory_space<vmem>>, vector<1x128xf32>
    %5 = vector.broadcast %4 : vector<1x128xf32> to vector<64x128xf32>
    %6 = arith.mulf %3, %5 : vector<64x128xf32>
    %c0_6 = arith.constant 0 : index
    %c0_7 = arith.constant 0 : index
    %7 = vector.load %arg4[%c0_6, %c0_7] : memref<1x128xf32, #tpu.memory_space<vmem>>, vector<1x128xf32>
    %8 = vector.broadcast %7 : vector<1x128xf32> to vector<64x128xf32>
    %9 = arith.addf %6, %8 : vector<64x128xf32>
    %cst_8 = arith.constant 0.000000e+00 : f32
    %10 = vector.broadcast %cst_8 : f32 to vector<64x128xf32>
    %11 = arith.maximumf %9, %10 : vector<64x128xf32>
    %12 = arith.truncf %11 : vector<64x128xf32> to vector<64x128xbf16>
    %c0_9 = arith.constant 0 : index
    %c0_10 = arith.constant 0 : index
    %c0_11 = arith.constant 0 : index
    %13 = vector.load %arg5[%c0_9, %c0_10, %c0_11] : memref<1x64x128xbf16, #tpu.memory_space<vmem>>, vector<1x64x128xbf16>
    %14 = vector.shape_cast %13 : vector<1x64x128xbf16> to vector<64x128xbf16>
    %15 = vector.shape_cast %12 : vector<64x128xbf16> to vector<1x64x128xbf16>
    tpu.vector_store %arg5[%c0_9, %c0_10, %c0_11], %15 {strides = array<i32>} : memref<1x64x128xbf16, #tpu.memory_space<vmem>>, vector<1x64x128xbf16>,
    return
  }
  func.func @transform_0(%arg0: i32) -> (i32, i32, i32) {
    %c0_i32 = arith.constant 0 : i32
    %c0_i32_0 = arith.constant 0 : i32
    %c0_i32_1 = arith.constant 0 : i32
    return %arg0, %c0_i32, %c0_i32_0 : i32, i32, i32
  }
  func.func @transform_1(%arg0: i32) -> (i32, i32) {
    %c0_i32 = arith.constant 0 : i32
    %c0_i32_0 = arith.constant 0 : i32
    %c0_i32_1 = arith.constant 0 : i32
    return %c0_i32, %c0_i32_0 : i32, i32
  }
  func.func @transform_2(%arg0: i32) -> (i32, i32) {
    %c0_i32 = arith.constant 0 : i32
    %c0_i32_0 = arith.constant 0 : i32
    %c0_i32_1 = arith.constant 0 : i32
    return %c0_i32, %c0_i32_0 : i32, i32
  }
  func.func @transform_3(%arg0: i32) -> (i32, i32) {
    %c0_i32 = arith.constant 0 : i32
    %c0_i32_0 = arith.constant 0 : i32
    %c0_i32_1 = arith.constant 0 : i32
    return %c0_i32, %c0_i32_0 : i32, i32
  }
  func.func @transform_4(%arg0: i32) -> (i32, i32, i32) {
    %c0_i32 = arith.constant 0 : i32
    %c0_i32_0 = arith.constant 0 : i32
    %c0_i32_1 = arith.constant 0 : i32
    return %arg0, %c0_i32, %c0_i32_0 : i32, i32, i32
  }
}

</mosaic_0001>

<bundles_post_ra>
// kernel: tpu_custom_call.1
= control target key start
LH: loop header
LB: loop body
LE: loop exit
PB: predicated region body
PF: predicated region fallthrough
CT: control target
= control target key end

     0   :  { %9 = vsyncpa [#allocation3], 0  ;;  %s835_s0 = inlined_call_operand.vmem [shape: bf16[8,64,36], index: 0, kind: input, shape index: {}]   ;;  %s836_s1 = inlined_call_operand.vmem [shape: bf16[36,128], index: 1, kind: input, shape index: {}]   ;;  %s837_s2 = inlined_call_operand.vmem [shape: f32[1,128], index: 2, kind: input, shape index: {}]   ;;  %s838_s3 = inlined_call_operand.vmem [shape: f32[1,128], index: 3, kind: input, shape index: {}]   ;;  %s839_s4 = inlined_call_operand.hbm [shape: bf16[8,64,128], index: 4, kind: output, shape index: {}]  }
   0x1   :  { %11 = vsyncpa [#allocation3 + $0x1], 0  ;;  %s714_s15 = smov 0   ;;  %s716_s16 = smov 0  }
   0x2   :  { %s718_s17 = smov 0   ;;  %s720_s18 = smov 0  }
   0x3 LB: > { %s735_s19 = sadd.s32 4294967295, %s684_s18   ;;  %s481_s20 = sadd.s32 4294967294, %s684_s18   ;;  %s684_s18 = sphi %s720_s18, %s845_s18   ;;  %s680_s17 = sphi %s718_s17, %s844_s17   ;;  %s676_s16 = sphi %s716_s16, %s843_s16   ;;  %s672_s15 = sphi %s714_s15, %s842_s15  }
   0x4   : > { %s739_s21 = sadd.s32 1, %s684_s18   ;;  %s113_s22 = sadd.s32 1, %s680_s17 }
   0x5   : > { %s110_s23 = ssub.s32 %s684_s18, %s739_s21  ;;  %p123_p0 = scmp.ne.s32.totalorder %s680_s17, %s676_s16 }
   0x6   : > { %p111_p1 = scmp.eq.s32.totalorder %s110_s23, 0  ;;  %p124_p2 = scmp.eq.s32.totalorder %s735_s19, 7 }
   0x7   : > { %p129_p3 = scmp.ne.s32.totalorder %s676_s16, %s672_s15  ;;  %p130_p4 = scmp.eq.s32.totalorder %s481_s20, 7 }
   0x8   : > { %s750_s24 = scalar_select %p111_p1, %s680_s17, %s113_s22  }
   0x9   : > { %p752_p5 = por %p124_p2, %p123_p0  ;;  %p756_p6 = por %p130_p4, %p129_p3 }
   0xa   : > { %p484_p7 = scmp.ge.s32.totalorder %s684_s18, 1  ;;  %p165_p8 = scmp.lt.s32.totalorder %s684_s18, 9 }
   0xc   : > { %p166_p9 = pnand %p484_p7, %p165_p8 }
   0xd   : > { %p191_p10 = scmp.lt.s32.totalorder (!%p166_p9), %s735_s19, 7  ;;  %s188_s14 = sand.u32 (!%p166_p9), 1, %s676_s16  }
   0xe   : > { %169 = sbr.rel (%p166_p9) target bundleno = 253 (0xfd), region = 36  ;;  %s485_s23 = sshll.u32 (!%p166_p9), %s188_s14, 5 }
   0xf   : > { %s190_s27 = scalar_lea.vmem (!%p166_p9), [#allocation2], %s485_s23  ;;  %s523_s29 = sshll.u32 (!%p166_p9), %s735_s19, 9 }
  0x10   : > { %s419_s28 = sshll.u32 (!%p166_p9), %s190_s27, 4  ;;  %s789_s6 = scalar_lea.hbm (!%p166_p9), %s839_s4, %s523_s29  ;;  %s791_s28 = int_to_ptr.vmem [resolvable:$true] %s419_s28 }
  0x11   : > { %s624_s7 = scalar_lea.vmem (!%p166_p9), %s791_s28, 512 }
  0x12   : > { %p625_p11 = scmp.ne.s32.totalorder (!%p166_p9), %s791_s28, %s624_s7 }
  0x13   : > { %v617_v0 = vld [vmem:[%s836_s1 + $0x10] ss:$0 sps:$4 sm:$0x33]   ;;  %vm258_vm0 = vcmask 1041408   ;;  %v618_v1 = vld [vmem:[%s836_s1 + $0x8] sm:$0xff]   ;;  %s192_s5 = scalar_select %p191_p10, %s735_s19, 7 }
  0x14   : > { %574 = vmatprep.subr.msk.bf16.mxu0 %vm258_vm0, %v617_v0  ;;  %575 = vmatprep.subr.msk.bf16.mxu1 %vm258_vm0, %v617_v0  ;;  %v260_v2 = vsel %vm258_vm0, %v617_v0, 0  ;;  %v619_v3 = vld [vmem:[%s836_s1] sm:$0xff]   ;;  %vm245_vm1 = vcmask 293888   ;;  %s795_s19 = scalar_lea.sflag [#allocation3], %s188_s14  ;;  %p626_p12 = pnand %p625_p11, %p752_p5 }
  0x15   : > { %555 = vmatpush3.bf16.msra.mxu0 %v260_v2  ;;  %571 = vmatpush3.bf16.msra.mxu1 %v260_v2  ;;  %s514_s8 = sshll.u32 %s192_s5, 5  ;;  %v499_v8 = vld [vmem:[%s837_s2] ss:$0 sm:$0xff] }
  0x16   : > { %556 = vmatprep.subr.bf16.mxu0 %v618_v1  ;;  %569 = vmatprep.subr.bf16.mxu1 %v618_v1  ;;  %s195_s11 = scalar_lea.vmem %s835_s0, %s514_s8  ;;  %v500_v15 = vld [vmem:[%s838_s3] ss:$0 sm:$0xff]  ;;  %p627_p13 = pneg %p626_p12 }
  0x17   : > { %v620_v4 = vld [vmem:[%s195_s11] sm:$0xff]   ;;  %v621_v5 = vld [vmem:[%s195_s11 + $0x10] sm:$0xff]   ;;  %v622_v6 = vld [vmem:[%s195_s11 + $0x8] sm:$0xff]   ;;  %s686_s8 = smov [#allocation2]  }
  0x18   : > { %560 = vmatprep.mubr.msk.bf16.mxu0 %vm245_vm1, %v620_v4  ;;  %564 = vmatprep.mubr.msk.bf16.mxu1 %vm245_vm1, %v621_v5  ;;  %v623_v7 = vld [vmem:[%s195_s11 + $0x18] sm:$0xff]   ;;  %s628_s9 = sshll.u32 %s686_s8, 4  ;;  %s629_s9 = int_to_ptr.vmem [resolvable:$false] %s628_s9 }
  0x19   : > { %557 = vmatpush3.bf16.msra.mxu0 %v618_v1  ;;  %572 = vmatpush3.bf16.msra.mxu1 %v618_v1  ;;  %s630_s10 = scalar_lea.vmem %s629_s9, 1024  ;;  %p631_p0 = scmp.lt.s32.totalorder %s791_s28, %s629_s9 }
  0x1a   : > { %558 = vmatprep.subr.bf16.mxu0 %v619_v3  ;;  %570 = vmatprep.subr.bf16.mxu1 %v619_v3  ;;  %p632_p1 = scmp.lt.s32.totalorder %s630_s10, %s624_s7 }
  0x1c   : > { %p633_p2 = por %p632_p1, %p631_p0 }
  0x1d   : > { %559 = vmatpush3.bf16.msra.mxu0 %v619_v3  ;;  %573 = vmatpush3.bf16.msra.mxu1 %v619_v3 }
  0x1e   : > { %p634_p3 = pnand %p633_p2, %p627_p13 }
  0x20   : > { %561 = vmatmul.mubr.msk.bf16.vlgmr.msra.gmra.mxu0 %vm245_vm1, %v622_v6  ;;  %565 = vmatmul.mubr.msk.bf16.vlgmr.msra.gmra.mxu1 %vm245_vm1, %v623_v7 }
  0xe0   : > { %v562_v9 = vpop.f32.mrf.mxu0  ;;  %v566_v10 = vpop.f32.mrf.mxu1 }
  0xe1   : > { %v336_v11 = vmul.f32 %v562_v9, %v499_v8  ;;  %v340_v12 = vmul.f32 %v566_v10, %v499_v8 }
  0xe2   : > { %v296_v13 = vpop.f32.mrf.mxu0  ;;  %v312_v14 = vpop.f32.mrf.mxu1 }
  0xe3   : > { %v334_v16 = vmul.f32 %v499_v8, %v296_v13  ;;  %v338_v17 = vmul.f32 %v499_v8, %v312_v14  ;;  %v351_v20 = vadd.f32 %v500_v15, %v336_v11  ;;  %v355_v21 = vadd.f32 %v500_v15, %v340_v12 }
  0xe4   : > { %v563_v18 = vpop.f32.mrf.mxu0  ;;  %v567_v19 = vpop.f32.mrf.mxu1 }
  0xe5   : > { %v337_v22 = vmul.f32 %v563_v18, %v499_v8  ;;  %v341_v23 = vmul.f32 %v567_v19, %v499_v8  ;;  %v349_v26 = vadd.f32 %v500_v15, %v334_v16  ;;  %v353_v27 = vadd.f32 %v500_v15, %v338_v17 }
  0xe6   : > { %v299_v24 = vpop.f32.mrf.mxu0  ;;  %v315_v25 = vpop.f32.mrf.mxu1  ;;  %v359_v34 = vmax.f32 %v351_v20, 0.0  ;;  %v363_v35 = vmax.f32 %v355_v21, 0.0 }
  0xe7   : > { %v335_v28 = vmul.f32 %v499_v8, %v299_v24  ;;  %v339_v29 = vmul.f32 %v499_v8, %v315_v25  ;;  %v352_v30 = vadd.f32 %v500_v15, %v337_v22  ;;  %v356_v31 = vadd.f32 %v500_v15, %v341_v23 }
  0xe8   : > { %v357_v38 = vmax.f32 %v349_v26, 0.0  ;;  %v361_v39 = vmax.f32 %v353_v27, 0.0 }
  0xe9   : > { %v350_v32 = vadd.f32 %v500_v15, %v335_v28  ;;  %v354_v33 = vadd.f32 %v500_v15, %v339_v29  ;;  %v360_v36 = vmax.f32 %v352_v30, 0.0  ;;  %v364_v37 = vmax.f32 %v356_v31, 0.0 }
  0xeb   : > { %v358_v40 = vmax.f32 %v350_v32, 0.0  ;;  %v362_v41 = vmax.f32 %v354_v33, 0.0  ;;  %v532_v42 = vpack.c.bf16 %v360_v36, %v359_v34  ;;  %v542_v43 = vpack.c.bf16 %v364_v37, %v363_v35 }
  0xed   : > { %v527_v44 = vpack.c.bf16 %v358_v40, %v357_v38  ;;  %v537_v45 = vpack.c.bf16 %v362_v41, %v361_v39  ;;  %544 = vst [vmem:[%s190_s27 + $0x8] sm:$0xff] %v532_v42   ;;  %546 = vst [vmem:[%s190_s27 + $0x18] sm:$0xff] %v542_v43  }
  0xef   : > { %528 = vst [vmem:[%s190_s27] sm:$0xff] %v527_v44   ;;  %545 = vst [vmem:[%s190_s27 + $0x10] sm:$0xff] %v537_v45  }
  0xf0   : > { %637 = shalt.err (!%p634_p3)
}
  0xf1   : > { %s638_s11 = scalar_lea.hbm %s789_s6, 512  ;;  %s642_s14 = scalar_lea.hbm %s839_s4, 4096 }
  0xf2   : > { %p639_p4 = scmp.ne.s32.totalorder %s789_s6, %s638_s11  ;;  %p643_p9 = scmp.lt.s32.totalorder %s789_s6, %s839_s4 }
  0xf3   : > { %p644_p10 = scmp.lt.s32.totalorder %s642_s14, %s638_s11 }
  0xf4   : > { %p640_p7 = pnand %p639_p4, %p752_p5 }
  0xf5   : > { %p645_p11 = por %p644_p10, %p643_p9 }
  0xf6   : > { %p641_p8 = pneg %p640_p7 }
  0xf8   : > { %p646_p12 = pnand %p645_p11, %p641_p8 }
  0xfa   : > { %649 = shalt.err (!%p646_p12)
}
  0xfb   : > { %s687_s23 = smov 64   ;;  %s688_s27 = smov 4  }
  0xfc   : > { %576 = dma.vmem_to_hbm [thread:$0]  (%p752_p5), %s791_s28, 512, %s789_s6, %s795_s19, %s687_s23, %s687_s23, %s688_s27  }
  0xfd PF: > { %p582_p13 = scmp.ge.s32.totalorder %s684_s18, 2  ;;  %s434_s29 = sand.u32 1, %s672_s15  }
  0xfe   : > { %s435_s30 = scalar_lea.sflag [#allocation3], %s434_s29 }
  0xff   : > { %p579_p0 = pnand %p582_p13, %p756_p6 }
 0x101   : > { %p580_p1 = pneg %p579_p0 }
 0x103   : > { %667 = dma.done.wait (%p580_p1), %s435_s30, 512  }
 0x104   : > { %669 = vsyncadd (%p580_p1), %s435_s30, 4294966784  ;;  %p14_p2 = scmp.ge.s32.totalorder %s739_s21, 10   ;;  %s842_s15 = smov %s676_s16 }
 0x105   : > { %s843_s16 = smov %s680_s17  ;;  %s844_s17 = smov %s750_s24 }
 0x106   : > { %s845_s18 = smov %s739_s21  ;;  %16 = sbr.rel (!%p14_p2) target bundleno = 3 (0x3), region = 71 }
 0x10b   :  { %440 = vsyncpa [#allocation3], 1 }
 0x10c   :  { %442 = vsyncpa [#allocation3 + $0x1], 1 }

</bundles_post_ra>
